<compile_context>
chip_gen: v7x
topology: tpu7x:2x2x1
jax: 0.10.0
libtpu: 0.0.40
codegen_flags: <defaults>
</compile_context>

<pallas_src>
import functools

import jax
import jax.numpy as jnp
from jax.experimental import pallas as pl
from jax.experimental.pallas import tpu as pltpu


def _round_up(x, m):
    return ((x + m - 1) // m) * m


# --------------------------------------------------------------------------
# Kernel: one-hot x (block-diagonal replicated) table on the MXU.
# --------------------------------------------------------------------------
def _embed_kernel(labels_ref, table_ref, out_ref, *, v, v_pad, slots, pv):
    # labels_ref: (block_rows, slots)  int32   raw labels (may be -1 padding)
    # table_ref : (pv, h_out)          float   pv = slots * v_pad, h_out % 128 == 0
    # out_ref   : (block_rows, h_out)  float   lane-dense stores
    labels = labels_ref[...]
    bb = out_ref.shape[0]
    col = jax.lax.broadcasted_iota(jnp.int32, (bb, pv), 1)
    onehot = jnp.zeros((bb, pv), dtype=table_ref.dtype)
    for j in range(slots):  # static, small (<= 4) -> unrolled VPU compares
        lab_j = labels[:, j:j + 1]                       # (bb, 1)
        valid = (lab_j >= 0) & (lab_j < v)
        # Invalid / padded labels map to `pv`, which never matches the iota,
        # so they contribute a zero row and cannot corrupt another slot.
        tgt = jnp.where(valid, lab_j + j * v_pad, pv)
        onehot = onehot + (col == tgt).astype(table_ref.dtype)
    out_ref[...] = jnp.dot(
        onehot, table_ref[...],
        preferred_element_type=jnp.float32,
        precision=jax.lax.Precision.HIGHEST,
    ).astype(out_ref.dtype)


# --------------------------------------------------------------------------
# Packed-table construction (done once per table, not per forward call).
# --------------------------------------------------------------------------
def build_packed_table(table):
    """Pack a (V, H) table for lane-dense output.

    If H <= 128 and H divides 128, `slots = 128 // H` logical rows share one
    128-lane output row via a block-diagonal replicated (slots*V_pad, 128)
    table.  Otherwise falls back to a single zero-padded block with
    h_out = round_up(H, 128) (columns sliced off after the kernel).
    Returns (packed_table, slots, v_pad).
    """
    v, h = table.shape
    v_pad = _round_up(v, 8)
    slots = 128 // h if (h <= 128 and 128 % h == 0) else 1
    h_out = slots * h if slots > 1 else _round_up(h, 128)
    packed = jnp.zeros((slots * v_pad, h_out), dtype=table.dtype)
    for j in range(slots):
        packed = packed.at[j * v_pad:j * v_pad + v, j * h:(j + 1) * h].set(table)
    return packed, slots, v_pad


# --------------------------------------------------------------------------
# Wrapper.
# --------------------------------------------------------------------------
def embedding_lookup(labels, table, *, packed_state=None, block_rows=2048):
    """Pallas embedding lookup: table[labels] -> (B, H)."""
    b = labels.shape[0]
    v, h = table.shape
    if packed_state is None:
        packed_state = build_packed_table(table)
    packed_table, slots, v_pad = packed_state
    pv, h_out = packed_table.shape
    itemsize = jnp.dtype(table.dtype).itemsize

    # ---- Tile sizing ------------------------------------------------------
    bp = pl.cdiv(b, slots)                       # packed rows of real data
    block_rows = max(8, min(_round_up(block_rows, 8), _round_up(bp, 8)))

    # Keep the double-buffered working set under ~24 MiB (safe on v7x's
    # 32 MiB scoped VMEM; trivially safe on v5e/v6e).
    def _ws_bytes(br):
        return (2 * pv * h_out * itemsize                       # table (2 bufs)
                + br * (2 * h_out * itemsize                    # out (2 bufs)
                        + 2 * slots * 4                         # labels (2 bufs)
                        + pv * itemsize + h_out * 4))           # onehot + f32 acc
    while block_rows > 8 and _ws_bytes(block_rows) > 24 * 1024 * 1024:
        block_rows = max(8, (block_rows // 2) // 8 * 8)

    bp_pad = _round_up(bp, block_rows)
    grid = (bp_pad // block_rows,)

    # ---- Per-call wrapper glue (kept minimal) ------------------------------
    lab = labels.astype(jnp.int32)
    pad_total = bp_pad * slots - b
    if pad_total:
        lab = jnp.pad(lab, (0, pad_total), constant_values=-1)   # -1 -> zero rows
    lab = lab.reshape(bp_pad, slots)

    kernel = functools.partial(_embed_kernel, v=v, v_pad=v_pad, slots=slots, pv=pv)
    out = pl.pallas_call(
        kernel,
        out_shape=jax.ShapeDtypeStruct((bp_pad, h_out), table.dtype),
        grid_spec=pltpu.PrefetchScalarGridSpec(
            num_scalar_prefetch=0,
            grid=grid,
            in_specs=[
                pl.BlockSpec((block_rows, slots), lambda i: (i, 0)),  # labels
                pl.BlockSpec((pv, h_out), lambda i: (0, 0)),          # const table
            ],
            out_specs=pl.BlockSpec((block_rows, h_out), lambda i: (i, 0)),
        ),
        compiler_params=pltpu.CompilerParams(
            dimension_semantics=("parallel",)),
    )(lab, packed_table)

    if slots > 1:
        out = out.reshape(bp_pad * slots, h)     # free contiguous reshape
        return out[:b] if bp_pad * slots != b else out
    out = out[:b] if bp_pad != b else out
    return out[:, :h] if h_out != h else out


# --------------------------------------------------------------------------
# Module port.
# --------------------------------------------------------------------------
class CellTypeEmbedder:
    """JAX/Pallas port of the PyTorch CellTypeEmbedder."""

    def __init__(self, num_cell_types, hidden_size, dropout_prob=0.1, *, key,
                 table_dtype=jnp.float32):
        self.num_cell_types = num_cell_types
        self.hidden_size = hidden_size
        self.dropout_prob = dropout_prob
        # nn.Embedding default init: weights ~ N(0, 1); deterministic via `key`.
        self.embedding_table = jax.random.normal(
            key, (num_cell_types + 1, hidden_size)).astype(table_dtype)
        # Packed / padded table is built once, not on every forward call.
        self._packed_state = build_packed_table(self.embedding_table)

    def token_drop(self, labels, rng=None, force_drop_ids=None):
        """Drops labels to enable classifier-free guidance."""
        if force_drop_ids is None:
            if rng is None:
                raise ValueError(
                    "token_drop with dropout_prob > 0 requires an rng key")
            drop_ids = jax.random.uniform(rng, (labels.shape[0],)) < self.dropout_prob
        else:
            drop_ids = force_drop_ids == 1
        return jnp.where(drop_ids, self.num_cell_types, labels)

    def __call__(self, labels, train, rng=None, force_drop_ids=None):
        use_dropout = self.dropout_prob > 0
        if (train and use_dropout) or (force_drop_ids is not None):
            labels = self.token_drop(labels, rng, force_drop_ids)
        return embedding_lookup(labels, self.embedding_table,
                                packed_state=self._packed_state)


if __name__ == "__main__":
    num_cell_types = 10     # table has num_cell_types + 1 = 11 rows
    hidden_size = 32
    batch = 8

    root = jax.random.PRNGKey(0)
    k_table, k_labels, k_drop = jax.random.split(root, 3)

    embedder = CellTypeEmbedder(num_cell_types, hidden_size,
                                dropout_prob=0.1, key=k_table)
    labels = jax.random.randint(k_labels, (batch,), 0, num_cell_types,
                                dtype=jnp.int32)

    # Eval path (no token drop) -- check against a pure-JAX gather reference.
    out_eval = jax.block_until_ready(embedder(labels, train=False))
    ref_eval = jnp.take(embedder.embedding_table, labels, axis=0)
    assert out_eval.shape == (batch, hidden_size)
    assert jnp.allclose(out_eval, ref_eval, atol=1e-6, rtol=1e-6)

    # Train path (token drop enabled) -- same drop applied to the reference.
    out_train = jax.block_until_ready(embedder(labels, train=True, rng=k_drop))
    dropped = embedder.token_drop(labels, k_drop)
    ref_train = jnp.take(embedder.embedding_table, dropped, axis=0)
    assert jnp.allclose(out_train, ref_train, atol=1e-6, rtol=1e-6)

    # Forced-drop path (classifier-free guidance ids).
    force_ids = jnp.array([1, 0, 1, 0, 0, 0, 1, 0], dtype=jnp.int32)
    out_forced = jax.block_until_ready(
        embedder(labels, train=False, force_drop_ids=force_ids))
    ref_forced = jnp.take(
        embedder.embedding_table,
        jnp.where(force_ids == 1, num_cell_types, labels), axis=0)
    assert jnp.allclose(out_forced, ref_forced, atol=1e-6, rtol=1e-6)

    # Ragged batch: exercises the pad-and-slice path (batch not a multiple of
    # the 4-rows-per-128-lane packing factor).
    labels5 = labels[:5]
    out5 = jax.block_until_ready(embedder(labels5, train=False))
    ref5 = jnp.take(embedder.embedding_table, labels5, axis=0)
    assert out5.shape == (5, hidden_size)
    assert jnp.allclose(out5, ref5, atol=1e-6, rtol=1e-6)

    print("KERNEL_OK")
</pallas_src>

<mosaic_0001>
module attributes {stable_mosaic.version = 11 : i64} {
  func.func @_embed_kernel(%arg0: i32, %arg1: memref<8x4xi32, #tpu.memory_space<vmem>>, %arg2: memref<64x128xf32, #tpu.memory_space<vmem>>, %arg3: memref<8x128xf32, #tpu.memory_space<vmem>>) attributes {dimension_semantics = [#tpu.dimension_semantics<parallel>], iteration_bounds = array<i64: 1>, scalar_prefetch = 0 : i64, scratch_operands = 0 : i64, tpu.core_type = #tpu.core_type<tc>, window_params = [{transform_indices = @transform_0, window_bounds = array<i64: 8, 4>}, {pipeline_mode = #tpu.pipeline_mode<synchronous>, transform_indices = @transform_1, window_bounds = array<i64: 64, 128>}, {transform_indices = @transform_2, window_bounds = array<i64: 8, 128>}]} {
    %c0 = arith.constant 0 : index
    %c0_0 = arith.constant 0 : index
    %0 = vector.load %arg1[%c0, %c0_0] : memref<8x4xi32, #tpu.memory_space<vmem>>, vector<8x4xi32>
    %1 = tpu.iota {dimensions = array<i32: 1>} : vector<8x64xi32>
    %cst = arith.constant 0.000000e+00 : f32
    %2 = vector.broadcast %cst : f32 to vector<8x64xf32>
    %3 = vector.extract_strided_slice %0 {offsets = [0, 0], sizes = [8, 1], strides = [1, 1]} : vector<8x4xi32> to vector<8x1xi32>
    %c0_i32 = arith.constant 0 : i32
    %4 = vector.broadcast %c0_i32 : i32 to vector<8x1xi32>
    %5 = arith.cmpi sge, %3, %4 : vector<8x1xi32>
    %c11_i32 = arith.constant 11 : i32
    %6 = vector.broadcast %c11_i32 : i32 to vector<8x1xi32>
    %7 = arith.cmpi slt, %3, %6 : vector<8x1xi32>
    %8 = arith.andi %5, %7 : vector<8x1xi1>
    %c0_i32_1 = arith.constant 0 : i32
    %9 = vector.broadcast %c0_i32_1 : i32 to vector<8x1xi32>
    %10 = arith.addi %3, %9 : vector<8x1xi32>
    %c64_i32 = arith.constant 64 : i32
    %11 = vector.broadcast %c64_i32 : i32 to vector<8x1xi32>
    %12 = arith.select %8, %10, %11 : vector<8x1xi1>, vector<8x1xi32>
    %13 = vector.broadcast %12 : vector<8x1xi32> to vector<8x64xi32>
    %14 = arith.cmpi eq, %1, %13 : vector<8x64xi32>
    %15 = arith.extui %14 : vector<8x64xi1> to vector<8x64xi32>
    %16 = arith.sitofp %15 : vector<8x64xi32> to vector<8x64xf32>
    %17 = arith.addf %2, %16 : vector<8x64xf32>
    %18 = vector.extract_strided_slice %0 {offsets = [0, 1], sizes = [8, 1], strides = [1, 1]} : vector<8x4xi32> to vector<8x1xi32>
    %c0_i32_2 = arith.constant 0 : i32
    %19 = vector.broadcast %c0_i32_2 : i32 to vector<8x1xi32>
    %20 = arith.cmpi sge, %18, %19 : vector<8x1xi32>
    %c11_i32_3 = arith.constant 11 : i32
    %21 = vector.broadcast %c11_i32_3 : i32 to vector<8x1xi32>
    %22 = arith.cmpi slt, %18, %21 : vector<8x1xi32>
    %23 = arith.andi %20, %22 : vector<8x1xi1>
    %c16_i32 = arith.constant 16 : i32
    %24 = vector.broadcast %c16_i32 : i32 to vector<8x1xi32>
    %25 = arith.addi %18, %24 : vector<8x1xi32>
    %c64_i32_4 = arith.constant 64 : i32
    %26 = vector.broadcast %c64_i32_4 : i32 to vector<8x1xi32>
    %27 = arith.select %23, %25, %26 : vector<8x1xi1>, vector<8x1xi32>
    %28 = vector.broadcast %27 : vector<8x1xi32> to vector<8x64xi32>
    %29 = arith.cmpi eq, %1, %28 : vector<8x64xi32>
    %30 = arith.extui %29 : vector<8x64xi1> to vector<8x64xi32>
    %31 = arith.sitofp %30 : vector<8x64xi32> to vector<8x64xf32>
    %32 = arith.addf %17, %31 : vector<8x64xf32>
    %33 = vector.extract_strided_slice %0 {offsets = [0, 2], sizes = [8, 1], strides = [1, 1]} : vector<8x4xi32> to vector<8x1xi32>
    %c0_i32_5 = arith.constant 0 : i32
    %34 = vector.broadcast %c0_i32_5 : i32 to vector<8x1xi32>
    %35 = arith.cmpi sge, %33, %34 : vector<8x1xi32>
    %c11_i32_6 = arith.constant 11 : i32
    %36 = vector.broadcast %c11_i32_6 : i32 to vector<8x1xi32>
    %37 = arith.cmpi slt, %33, %36 : vector<8x1xi32>
    %38 = arith.andi %35, %37 : vector<8x1xi1>
    %c32_i32 = arith.constant 32 : i32
    %39 = vector.broadcast %c32_i32 : i32 to vector<8x1xi32>
    %40 = arith.addi %33, %39 : vector<8x1xi32>
    %c64_i32_7 = arith.constant 64 : i32
    %41 = vector.broadcast %c64_i32_7 : i32 to vector<8x1xi32>
    %42 = arith.select %38, %40, %41 : vector<8x1xi1>, vector<8x1xi32>
    %43 = vector.broadcast %42 : vector<8x1xi32> to vector<8x64xi32>
    %44 = arith.cmpi eq, %1, %43 : vector<8x64xi32>
    %45 = arith.extui %44 : vector<8x64xi1> to vector<8x64xi32>
    %46 = arith.sitofp %45 : vector<8x64xi32> to vector<8x64xf32>
    %47 = arith.addf %32, %46 : vector<8x64xf32>
    %48 = vector.extract_strided_slice %0 {offsets = [0, 3], sizes = [8, 1], strides = [1, 1]} : vector<8x4xi32> to vector<8x1xi32>
    %c0_i32_8 = arith.constant 0 : i32
    %49 = vector.broadcast %c0_i32_8 : i32 to vector<8x1xi32>
    %50 = arith.cmpi sge, %48, %49 : vector<8x1xi32>
    %c11_i32_9 = arith.constant 11 : i32
    %51 = vector.broadcast %c11_i32_9 : i32 to vector<8x1xi32>
    %52 = arith.cmpi slt, %48, %51 : vector<8x1xi32>
    %53 = arith.andi %50, %52 : vector<8x1xi1>
    %c48_i32 = arith.constant 48 : i32
    %54 = vector.broadcast %c48_i32 : i32 to vector<8x1xi32>
    %55 = arith.addi %48, %54 : vector<8x1xi32>
    %c64_i32_10 = arith.constant 64 : i32
    %56 = vector.broadcast %c64_i32_10 : i32 to vector<8x1xi32>
    %57 = arith.select %53, %55, %56 : vector<8x1xi1>, vector<8x1xi32>
    %58 = vector.broadcast %57 : vector<8x1xi32> to vector<8x64xi32>
    %59 = arith.cmpi eq, %1, %58 : vector<8x64xi32>
    %60 = arith.extui %59 : vector<8x64xi1> to vector<8x64xi32>
    %61 = arith.sitofp %60 : vector<8x64xi32> to vector<8x64xf32>
    %62 = arith.addf %47, %61 : vector<8x64xf32>
    %c0_11 = arith.constant 0 : index
    %c0_12 = arith.constant 0 : index
    %63 = vector.load %arg2[%c0_11, %c0_12] : memref<64x128xf32, #tpu.memory_space<vmem>>, vector<64x128xf32>
    %cst_13 = arith.constant dense<0.000000e+00> : vector<8x128xf32>
    %64 = tpu.matmul %62, %63, %cst_13 {dimension_numbers = #tpu.dot_dimension_numbers<[1], [0], [0], [1], [0, 0, 1, 1], [], []>, precision = #tpu.contract_precision<fp32>} : vector<8x64xf32>, vector<64x128xf32>, vector<8x128xf32> -> vector<8x128xf32>
    %c0_14 = arith.constant 0 : index
    %c0_15 = arith.constant 0 : index
    %65 = vector.load %arg3[%c0_14, %c0_15] : memref<8x128xf32, #tpu.memory_space<vmem>>, vector<8x128xf32>
    tpu.vector_store %arg3[%c0_14, %c0_15], %64 {strides = array<i32>} : memref<8x128xf32, #tpu.memory_space<vmem>>, vector<8x128xf32>,
    return
  }
  func.func @transform_0(%arg0: i32) -> (i32, i32) {
    %c0_i32 = arith.constant 0 : i32
    %c0_i32_0 = arith.constant 0 : i32
    return %arg0, %c0_i32 : i32, i32
  }
  func.func @transform_1(%arg0: i32) -> (i32, i32) {
    %c0_i32 = arith.constant 0 : i32
    %c0_i32_0 = arith.constant 0 : i32
    %c0_i32_1 = arith.constant 0 : i32
    return %c0_i32, %c0_i32_0 : i32, i32
  }
  func.func @transform_2(%arg0: i32) -> (i32, i32) {
    %c0_i32 = arith.constant 0 : i32
    %c0_i32_0 = arith.constant 0 : i32
    return %arg0, %c0_i32 : i32, i32
  }
}

</mosaic_0001>

<bundles_post_ra>
// kernel: tpu_custom_call.1
= control target key start
LH: loop header
LB: loop body
LE: loop exit
PB: predicated region body
PF: predicated region fallthrough
CT: control target
= control target key end

     0   :  { %7 = vsyncpa [#allocation3], 0  ;;  %s1114_s0 = inlined_call_operand.vmem [shape: s32[8,4], index: 0, kind: input, shape index: {}]   ;;  %s1115_s1 = inlined_call_operand.hbm [shape: f32[64,128], index: 1, kind: input, shape index: {}]   ;;  %s1116_s2 = inlined_call_operand.hbm [shape: f32[8,128], index: 2, kind: output, shape index: {}]  }
   0x1   :  { %8 = vsyncpa [#allocation4], 0  ;;  %s949_s9 = smov [#allocation2]   ;;  %s901_s13 = scalar_lea.hbm %s1115_s1, 1024 }
   0x2   :  { %s16_s10 = sshll.u32 %s949_s9, 4  ;;  %p902_p0 = scmp.ne.s32.totalorder %s1115_s1, %s901_s13  ;;  %s17_s10 = int_to_ptr.vmem [resolvable:$true] %s16_s10 }
   0x3   :  { %p905_p1 = scmp.lt.u32.totalorder %s901_s13, %s1115_s1 }
   0x5   :  { %p907_p2 = pnand %p905_p1, %p902_p0 }
   0x7   :  { %910 = shalt.err (!%p907_p2)
}
   0x8   :  { %s911_s18 = scalar_lea.vmem %s17_s10, 1024  ;;  %p916_p4 = scmp.lt.s32.totalorder %s17_s10, %s17_s10 }
   0x9   :  { %p912_p3 = scmp.ne.s32.totalorder %s17_s10, %s911_s18  ;;  %p917_p5 = scmp.lt.s32.totalorder %s911_s18, %s911_s18 }
   0xb   :  { %p918_p6 = por %p917_p5, %p916_p4 }
   0xd   :  { %p919_p7 = pnand %p918_p6, %p912_p3 }
   0xf   :  { %922 = shalt.err (!%p919_p7)
}
  0x10   :  { %s950_s19 = smov 128   ;;  %s951_s20 = smov 8  }
  0x11   :  { %22 = dma.hbm_to_vmem [thread:$0]  %s1115_s1, 1024, %s17_s10, [#allocation3], %s950_s19, %s950_s19, %s951_s20  }
  0x12   :  { %945 = dma.done.wait [#allocation3], 1024  }
  0x13   :  { %946 = vsyncadd [#allocation3], 4294966272  ;;  %v952_v0 = vmov 0   ;;  %v953_v1 = vmov 2   ;;  %v26_v2 = vld [vmem:[%s1114_s0] sm:$0xff]  ;;  %v68_v10 = vld [vmem:[#allocation2 + $0x8] sm:$0xff] }
  0x14   :  { %896 = vset.pattern.permute.xlu0 %v952_v0  ;;  %898 = vset.pattern.permute.xlu1 %v953_v1  ;;  %vm29_vm0 = vcmp.ge.s32.totalorder %v26_v2, 0  ;;  %vm30_vm1 = vcmp.lt.s32.totalorder %v26_v2, 11  ;;  %v49_v3 = vadd.s32 32, %v26_v2  ;;  %v40_v4 = vadd.s32 16, %v26_v2  ;;  %v67_v9 = vld [vmem:[#allocation2] sm:$0xff]  ;;  %v69_v19 = vld [vmem:[#allocation2 + $0x10] sm:$0xff] }
  0x15   :  { %vm990_vm2 = vmand %vm29_vm0, %vm30_vm1  ;;  %v58_v6 = vadd.s32 48, %v26_v2  ;;  %v80_v11 = vand.u32 4294901760, %v67_v9  ;;  %v83_v12 = vand.u32 4294901760, %v68_v10  ;;  %v954_v15 = vmov 0.0|0.0   ;;  %v70_v20 = vld [vmem:[#allocation2 + $0x18] sm:$0xff]  ;;  %v71_v28 = vld [vmem:[#allocation2 + $0x20] sm:$0xff] }
  0x16   :  { %v32_v7 = vsel %vm990_vm2, %v26_v2, 64  ;;  %v50_v8 = vsel %vm990_vm2, %v49_v3, 64  ;;  %v41_v13 = vsel %vm990_vm2, %v40_v4, 64  ;;  %840 = vmatprep.subr.bf16.mxu0 %v954_v15  ;;  %804 = vmatprep.subr.bf16.mxu1 %v954_v15  ;;  %v955_v21 = vmov 1   ;;  %v72_v29 = vld [vmem:[#allocation2 + $0x28] sm:$0xff]  ;;  %v73_v33 = vld [vmem:[#allocation2 + $0x30] sm:$0xff] }
  0x17   :  { %34 = vperm.xlu0 %896, %v32_v7   ;;  %52 = vperm.xlu1 %898, %v50_v8   ;;  %v59_v14 = vsel %vm990_vm2, %v58_v6, 64  ;;  %v1003_v16 = vpack.c.bf16 %v83_v12, %v80_v11  ;;  %v1005_v17 = vsub.f32 %v67_v9, %v80_v11  ;;  %v1007_v18 = vsub.f32 %v68_v10, %v83_v12  ;;  %v74_v34 = vld [vmem:[#allocation2 + $0x38] sm:$0xff]  ;;  %s959_s0 = smov [#allocation5]  }
  0x18   :  { %v956_v22 = vmov 3   ;;  %v86_v23 = vand.u32 4294901760, %v69_v19  ;;  %v89_v24 = vand.u32 4294901760, %v70_v20  ;;  %v92_v30 = vand.u32 4294901760, %v71_v28  ;;  %s623_s1 = sshll.u32 %s959_s0, 4  ;;  %s624_s1 = int_to_ptr.vmem [resolvable:$true] %s623_s1 }
  0x19   :  { %842 = vmatpush3.bf16.msra.mxu0 %v1003_v16  ;;  %806 = vmatpush3.bf16.msra.mxu1 %v1003_v16  ;;  %v95_v31 = vand.u32 4294901760, %v72_v29  ;;  %v98_v35 = vand.u32 4294901760, %v73_v33  ;;  %v101_v36 = vand.u32 4294901760, %v74_v34  ;;  %v165_v42 = vand.u32 4294901760, %v1005_v17  ;;  %s923_s25 = scalar_lea.vmem %s624_s1, 128  ;;  %p928_p9 = scmp.lt.s32.totalorder %s624_s1, %s624_s1 }
  0x1a   :  { %v1012_v25 = vpack.c.bf16 %v89_v24, %v86_v23  ;;  %843 = vmatprep.subr.bf16.mxu0 %v954_v15  ;;  %v1015_v26 = vsub.f32 %v69_v19, %v86_v23  ;;  %v1017_v27 = vsub.f32 %v70_v20, %v89_v24  ;;  %807 = vmatprep.subr.bf16.mxu1 %v954_v15  ;;  %v172_v43 = vand.u32 4294901760, %v1007_v18  ;;  %p924_p8 = scmp.ne.s32.totalorder %s624_s1, %s923_s25  ;;  %p929_p10 = scmp.lt.s32.totalorder %s923_s25, %s923_s25 }
  0x1b   :  { %897 = vset.pattern.permute.xlu0 %v955_v21  ;;  %899 = vset.pattern.permute.xlu1 %v956_v22  ;;  %v1022_v32 = vpack.c.bf16 %v95_v31, %v92_v30  ;;  %v1028_v37 = vpack.c.bf16 %v101_v36, %v98_v35  ;;  %v1032_v38 = vsub.f32 %v71_v28, %v92_v30  ;;  %vm957_vm3 = vmmov 0  }
  0x1c   :  { %43 = vperm.xlu0 %897, %v41_v13   ;;  %61 = vperm.xlu1 %899, %v59_v14   ;;  %v1034_v39 = vsub.f32 %v72_v29, %v95_v31  ;;  %v1036_v40 = vsub.f32 %v73_v33, %v98_v35  ;;  %v1038_v41 = vsub.f32 %v74_v34, %v101_v36  ;;  %v958_v44 = vmov 0.0   ;;  %p930_p11 = por %p929_p10, %p928_p9 }
  0x1d   :  { %845 = vmatpush3.bf16.msra.mxu0 %v1012_v25  ;;  %809 = vmatpush3.bf16.msra.mxu1 %v1012_v25  ;;  %v853_v45 = vpack.c.bf16 %v172_v43, %v165_v42  ;;  %v166_v46 = vsub.f32 %v1005_v17, %v165_v42  ;;  %v173_v47 = vsub.f32 %v1007_v18, %v172_v43  ;;  %v179_v50 = vand.u32 4294901760, %v1015_v26 }
  0x1e   :  { %846 = vmatprep.subr.bf16.mxu0 %v954_v15  ;;  %810 = vmatprep.subr.bf16.mxu1 %v954_v15  ;;  %v186_v51 = vand.u32 4294901760, %v1017_v27  ;;  %v193_v58 = vand.u32 4294901760, %v1032_v38  ;;  %v200_v59 = vand.u32 4294901760, %v1034_v39  ;;  %v207_v2 = vand.u32 4294901760, %v1036_v40  ;;  %p931_p12 = pnand %p930_p11, %p924_p8 }
  0x1f   :  { %763 = vmatprep.mubr.msk.f32.mxu0 %vm957_vm3, %v958_v44  ;;  %706 = vmatprep.mubr.msk.f32.mxu1 %vm957_vm3, %v958_v44  ;;  %v167_v48 = vand.u32 4294901760, %v166_v46  ;;  %v174_v49 = vand.u32 4294901760, %v173_v47  ;;  %v180_v54 = vsub.f32 %v1015_v26, %v179_v50  ;;  %v214_v3 = vand.u32 4294901760, %v1038_v41 }
  0x20   :  { %900 = vset.pattern.permute.xlu0 %v956_v22  ;;  %v856_v53 = vpack.c.bf16 %v186_v51, %v179_v50  ;;  %v187_v55 = vsub.f32 %v1017_v27, %v186_v51  ;;  %v859_v61 = vpack.c.bf16 %v200_v59, %v193_v58  ;;  %v194_v62 = vsub.f32 %v1032_v38, %v193_v58 }
  0x21   :  { %848 = vmatpush3.bf16.msra.mxu0 %v1022_v32  ;;  %812 = vmatpush3.bf16.msra.mxu1 %v1022_v32  ;;  %v817_v52 = vpack.c.bf16 %v174_v49, %v167_v48  ;;  %v181_v56 = vand.u32 4294901760, %v180_v54  ;;  %v201_v63 = vsub.f32 %v1034_v39, %v200_v59  ;;  %v862_v5 = vpack.c.bf16 %v214_v3, %v207_v2 }
  0x22   :  { %849 = vmatprep.subr.bf16.mxu0 %v954_v15  ;;  %813 = vmatprep.subr.bf16.mxu1 %v954_v15  ;;  %v188_v57 = vand.u32 4294901760, %v187_v55  ;;  %v195_v0 = vand.u32 4294901760, %v194_v62  ;;  %v208_v6 = vsub.f32 %v1036_v40, %v207_v2  ;;  %v215_v7 = vsub.f32 %v1038_v41, %v214_v3 }
  0x23   :  { %v202_v1 = vand.u32 4294901760, %v201_v63  ;;  %v829_v11 = vpack.c.bf16 %v1007_v18, %v1005_v17  ;;  %v832_v12 = vpack.c.bf16 %v1017_v27, %v1015_v26  ;;  %v835_v13 = vpack.c.bf16 %v1034_v39, %v1032_v38 }
  0x24   :  { %v820_v60 = vpack.c.bf16 %v188_v57, %v181_v56  ;;  %v209_v8 = vand.u32 4294901760, %v208_v6  ;;  %v216_v9 = vand.u32 4294901760, %v215_v7  ;;  %v838_v14 = vpack.c.bf16 %v1038_v41, %v1036_v40 }
  0x25   :  { %851 = vmatpush3.bf16.msra.mxu0 %v1028_v37  ;;  %815 = vmatpush3.bf16.msra.mxu1 %v1028_v37  ;;  %v823_v4 = vpack.c.bf16 %v202_v1, %v195_v0  ;;  %v27_v19 = vlaneseq  ;;  %vm75_vm8 = vcmask 523264  }
  0x26   :  { %852 = vmatprep.subr.bf16.mxu0 %v954_v15  ;;  %816 = vmatprep.subr.bf16.mxu1 %v954_v15  ;;  %v826_v10 = vpack.c.bf16 %v216_v9, %v209_v8 }
  0x27   :  { %v28_v20 = vand.u32 127, %v27_v19 }
  0x96   :  { %v35_v21 = vpop.permute.xlu0 %34  ;;  %v53_v22 = vpop.permute.xlu1 %52 }
  0x97   :  { %vm36_vm4 = vcmp.eq.s32.totalorder %v28_v20, %v35_v21  ;;  %vm54_vm5 = vcmp.eq.s32.totalorder %v28_v20, %v53_v22 }
  0x98   :  { %v632_v17 = vsel %vm36_vm4, 1.0, %v958_v44  ;;  %v634_v27 = vsel %vm54_vm5, 1.0, %v958_v44 }
  0x9b   :  { %v44_v23 = vpop.permute.xlu0 %43  ;;  %v62_v24 = vpop.permute.xlu1 %61 }
  0x9c   :  { %vm45_vm6 = vcmp.eq.s32.totalorder %v28_v20, %v44_v23  ;;  %vm63_vm7 = vcmp.eq.s32.totalorder %v28_v20, %v62_v24 }
  0x9d   :  { %v633_v18 = vsel %vm45_vm6, 1.0, %v958_v44  ;;  %v635_v28 = vsel %vm63_vm7, 1.0, %v958_v44 }
  0x9e   :  { %v48_v26 = vadd.f32 %v633_v18, %v632_v17 }
  0xa0   :  { %v57_v29 = vadd.f32 %v634_v27, %v48_v26 }
  0xa2   :  { %v66_v30 = vadd.f32 %v635_v28, %v57_v29 }
  0xa4   :  { %v77_v31 = vsel %vm75_vm8, %v66_v30, 0 }
  0xa5   :  { %v152_v33 = vand.u32 4294901760, %v77_v31 }
  0xa7   :  { %v153_v34 = vsub.f32 %v77_v31, %v152_v33 }
  0xa9   :  { %v154_v35 = vand.u32 4294901760, %v153_v34 }
  0xab   :  { %764 = vmatmul.mubr.f32.vlgmr.msra.gmra.mrb[0].mxu0 %v154_v35  ;;  %v155_v36 = vsub.f32 %v153_v34, %v154_v35 }
  0xac   :  { %854 = vmatpush3.bf16.msra.mxu0 %v853_v45  ;;  %782 = vmatprep.mubr.msk.f32.mxu0 %vm957_vm3, %v958_v44 }
  0xad   :  { %855 = vmatprep.subr.bf16.mxu0 %v954_v15  ;;  %v156_v38 = vand.u32 4294901760, %v155_v36 }
  0xaf   :  { %707 = vmatmul.mubr.f32.vlgmr.msra.gmra.mrb[0].mxu1 %v156_v38 }
  0xb0   :  { %818 = vmatpush3.bf16.msra.mxu1 %v817_v52  ;;  %857 = vmatpush3.bf16.msra.mxu0 %v856_v53 }
  0xb1   :  { %819 = vmatprep.subr.bf16.mxu1 %v954_v15  ;;  %858 = vmatprep.subr.bf16.mxu0 %v954_v15 }
  0xb2   :  { %725 = vmatprep.mubr.msk.f32.mxu1 %vm957_vm3, %v958_v44 }
  0xb4   :  { %821 = vmatpush3.bf16.msra.mxu1 %v820_v60  ;;  %860 = vmatpush3.bf16.msra.mxu0 %v859_v61 }
  0xb5   :  { %822 = vmatprep.subr.bf16.mxu1 %v954_v15  ;;  %861 = vmatprep.subr.bf16.mxu0 %v954_v15 }
  0xb8   :  { %824 = vmatpush3.bf16.msra.mxu1 %v823_v4  ;;  %863 = vmatpush3.bf16.msra.mxu0 %v862_v5 }
  0xb9   :  { %825 = vmatprep.subr.bf16.mxu1 %v954_v15  ;;  %864 = vmatprep.subr.bf16.mxu0 %v954_v15 }
  0xbb   :  { %783 = vmatmul.mubr.f32.vlgmr.msra.gmra.mrb[0].mxu0 %v152_v33 }
  0xbc   :  { %827 = vmatpush3.bf16.msra.mxu1 %v826_v10  ;;  %866 = vmatpush3.bf16.msra.mxu0 %v1003_v16 }
  0xbd   :  { %828 = vmatprep.subr.bf16.mxu1 %v954_v15  ;;  %867 = vmatprep.subr.bf16.mxu0 %v954_v15 }
  0xbe   :  { %801 = vmatprep.mubr.msk.f32.mxu0 %vm957_vm3, %v958_v44 }
  0xbf   :  { %726 = vmatmul.mubr.f32.vlgmr.msra.gmra.mrb[0].mxu1 %v152_v33 }
  0xc0   :  { %830 = vmatpush3.bf16.msra.mxu1 %v829_v11  ;;  %869 = vmatpush3.bf16.msra.mxu0 %v1012_v25 }
  0xc1   :  { %831 = vmatprep.subr.bf16.mxu1 %v954_v15  ;;  %870 = vmatprep.subr.bf16.mxu0 %v954_v15 }
  0xc2   :  { %744 = vmatprep.mubr.msk.f32.mxu1 %vm957_vm3, %v958_v44 }
  0xc4   :  { %833 = vmatpush3.bf16.msra.mxu1 %v832_v12  ;;  %872 = vmatpush3.bf16.msra.mxu0 %v1022_v32 }
  0xc5   :  { %834 = vmatprep.subr.bf16.mxu1 %v954_v15  ;;  %873 = vmatprep.subr.bf16.mxu0 %v954_v15 }
  0xc8   :  { %836 = vmatpush3.bf16.msra.mxu1 %v835_v13  ;;  %875 = vmatpush3.bf16.msra.mxu0 %v1028_v37 }
  0xc9   :  { %837 = vmatprep.subr.bf16.mxu1 %v954_v15 }
  0xcb   :  { %802 = vmatmul.mubr.f32.vlgmr.msra.gmra.mrb[0].mxu0 %v152_v33 }
  0xcc   :  { %839 = vmatpush3.bf16.msra.mxu1 %v838_v14 }
  0xcf   :  { %745 = vmatmul.mubr.f32.vlgmr.msra.gmra.mrb[0].mxu1 %v153_v34 }
 0x19e   :  { %v612_v16 = vpop.f32.mrb[0].mxu0 }
 0x19f   :  { %v803_v25 = vpop.f32.mrb[1].mxu0 }
 0x1a2   :  { %v357_v39 = vpop.f32.mrb[0].mxu1 }
 0x1a3   :  { %v876_v40 = vadd.f32 %v612_v16, %v357_v39  ;;  %v746_v41 = vpop.f32.mrb[1].mxu1 }
 0x1a5   :  { %616 = vst [vmem:[#allocation5] sm:$0xff] %v876_v40 }
 0x1a6   :  { %934 = shalt.err (!%p931_p12)
}
 0x1a7   :  { %s935_s28 = scalar_lea.hbm %s1116_s2, 128 }
 0x1a8   :  { %p936_p13 = scmp.ne.s32.totalorder %s1116_s2, %s935_s28  ;;  %p939_p0 = scmp.lt.u32.totalorder %s935_s28, %s1116_s2 }
 0x1aa   :  { %p941_p1 = pnand %p939_p0, %p936_p13 }
 0x1ac   :  { %944 = shalt.err (!%p941_p1)
}
 0x1ad   :  { %626 = dma.vmem_to_hbm [thread:$0]  %s624_s1, 128, %s1116_s2, [#allocation4]  }
 0x1ae   :  { %947 = dma.done.wait [#allocation4], 128  }
 0x1af   :  { %948 = vsyncadd [#allocation4], 4294967168 }
 0x1b0   :  { %630 = vsyncpa [#allocation3], 1 }
 0x1b1   :  { %631 = vsyncpa [#allocation4], 1 }

</bundles_post_ra>
